<compile_context>
chip_gen: v7x
topology: tpu7x:2x2x1
jax: 0.10.0
libtpu: 0.0.40
codegen_flags: <defaults>
</compile_context>

<pallas_src>
import math

import jax
import jax.numpy as jnp
from jax.experimental import pallas as pl
from jax.experimental.pallas import tpu as pltpu


def _coarse_gate_kernel(x_ref, res_ref, wx_ref, wr_ref, b_ref, out_ref):
    """fine_gate=False: one scalar gate per row.

    x_ref, res_ref, out_ref: (TM, d); wx_ref, wr_ref: (1, d); b_ref: (1, 1).
    """
    xf = x_ref[...].astype(jnp.float32)
    rf = res_ref[...].astype(jnp.float32)
    wx = wx_ref[...].astype(jnp.float32)
    wr = wr_ref[...].astype(jnp.float32)
    # dot(concat([x, r], -1), W^T) == sum(x * w_x + r * w_r) over the lane axis
    mix = jnp.sum(xf * wx + rf * wr, axis=-1, keepdims=True)
    mix = mix + b_ref[...].astype(jnp.float32)              # (TM, 1)
    gate = jax.nn.sigmoid(mix)                               # EUP
    out_ref[...] = (xf + gate * (rf - xf)).astype(out_ref.dtype)


def _fine_gate_kernel(x_ref, res_ref, wx_ref, wr_ref, b_ref, out_ref):
    """fine_gate=True: per-feature gate via two MXU matmuls.

    x_ref, res_ref, out_ref: (TM, d); wx_ref, wr_ref: (d, d); b_ref: (1, d).
    """
    # Feed native dtype straight to the MXU, accumulate in f32 (no up-casts).
    mix = (jnp.dot(x_ref[...], wx_ref[...], preferred_element_type=jnp.float32)
           + jnp.dot(res_ref[...], wr_ref[...], preferred_element_type=jnp.float32)
           + b_ref[...].astype(jnp.float32))                 # (TM, d)
    gate = jax.nn.sigmoid(mix)
    xf = x_ref[...].astype(jnp.float32)
    rf = res_ref[...].astype(jnp.float32)
    out_ref[...] = (xf + gate * (rf - xf)).astype(out_ref.dtype)


def _round_up(n, m):
    return ((n + m - 1) // m) * m


# Working-set budget (row tiles + resident weights).  Safe on every chip's
# scoped VMEM once we pass it as vmem_limit_bytes (physical: 128/128/64 MiB).
_VMEM_BUDGET = 24 << 20


def _pick_tile_rows(n_rows, d, itemsize, resident_bytes, budget_bytes=_VMEM_BUDGET):
    # x, residual and out blocks are each double-buffered by the pipeline.
    per_row = 3 * 2 * d * itemsize
    avail = max(budget_bytes - resident_bytes, 8 * per_row)
    tm = avail // per_row
    tm = min(tm, 1024, _round_up(n_rows, 8))
    return max(8, (tm // 8) * 8)


def gated_residual(x, residual, params):
    """Forward pass of GatedResidual.

    x, residual: (..., d) arrays with identical shapes.
    params: {"weight": (gate_dim, 2d), "bias": (gate_dim,)} with gate_dim == 1
            (fine_gate=False) or gate_dim == d (fine_gate=True), in PyTorch
            nn.Linear convention (mix = [x, residual] @ W.T + b).
    """
    assert x.shape == residual.shape
    d = x.shape[-1]
    lead = x.shape[:-1]
    n_rows = int(math.prod(lead)) if lead else 1

    w = params["weight"]
    b = params["bias"]
    gate_dim = w.shape[0]
    assert w.shape == (gate_dim, 2 * d) and gate_dim in (1, d)

    # pack 'b n *' -> (N, d)
    x2 = x.reshape(n_rows, d)
    r2 = residual.reshape(n_rows, d)

    if gate_dim == 1:
        kernel = _coarse_gate_kernel
        wx = w[:, :d]                       # (1, d)  x-half of the weight
        wr = w[:, d:]                       # (1, d)  residual-half
        b2 = b.reshape(1, 1)
    else:
        kernel = _fine_gate_kernel
        wx = w[:, :d].T                     # (d, d)  pre-transposed: mix = x @ Wx
        wr = w[:, d:].T                     # (d, d)
        b2 = b.reshape(1, d)
        # TODO(synk): for very large d (resident weights > VMEM budget) add a
        # K/N-tiled variant; current layout keeps both weight halves resident.

    itemsize = jnp.dtype(x.dtype).itemsize
    resident = (wx.size + wr.size + b2.size) * jnp.dtype(wx.dtype).itemsize
    tm = _pick_tile_rows(n_rows, d, itemsize, resident)
    grid = (pl.cdiv(n_rows, tm),)

    row_spec = lambda: pl.BlockSpec((tm, d), lambda i: (i, 0))
    const_spec = lambda shape: pl.BlockSpec(shape, lambda i: (0, 0))

    out = pl.pallas_call(
        kernel,
        out_shape=jax.ShapeDtypeStruct((n_rows, d), x.dtype),
        grid=grid,
        in_specs=[
            row_spec(),                     # x rows
            row_spec(),                     # residual rows
            const_spec(wx.shape),           # resident weights
            const_spec(wr.shape),
            const_spec(b2.shape),
        ],
        out_specs=row_spec(),
        compiler_params=pltpu.CompilerParams(
            dimension_semantics=("parallel",),
            vmem_limit_bytes=_VMEM_BUDGET + (4 << 20),   # headroom for spills
        ),
    )(x2, r2, wx, wr, b2)

    # unpack back to (..., d)
    return out.reshape(*lead, d)


def init_params(key, dim, fine_gate=False, dtype=jnp.float32):
    # PyTorch nn.Linear(2*dim, out) default init: U(-1/sqrt(2*dim), 1/sqrt(2*dim)).
    out_dim = dim if fine_gate else 1
    bound = 1.0 / math.sqrt(2 * dim)
    kw, kb = jax.random.split(key)
    return {
        "weight": jax.random.uniform(kw, (out_dim, 2 * dim), dtype, -bound, bound),
        "bias": jax.random.uniform(kb, (out_dim,), dtype, -bound, bound),
    }


def _reference(x, residual, params):
    # pure-JAX reference of the PyTorch module
    z = jnp.concatenate([x, residual], axis=-1)
    mix = z @ params["weight"].T + params["bias"]
    gate = jax.nn.sigmoid(mix)
    return x + gate * (residual - x)        # == x.lerp(residual, gate)


if __name__ == "__main__":
    key = jax.random.PRNGKey(0)
    k_p, k_pf, k_x, k_r = jax.random.split(key, 4)

    batch, seq, dim = 2, 8, 32
    x = jax.random.normal(k_x, (batch, seq, dim), jnp.float32)
    residual = jax.random.normal(k_r, (batch, seq, dim), jnp.float32)

    # default module config: fine_gate=False (scalar gate per position)
    params = init_params(k_p, dim, fine_gate=False)
    out = jax.block_until_ready(gated_residual(x, residual, params))
    ref = _reference(x, residual, params)
    assert out.shape == x.shape
    assert jnp.allclose(out, ref, atol=1e-5, rtol=1e-5), "coarse-gate mismatch"

    # fine_gate=True variant (per-feature gate)
    params_f = init_params(k_pf, dim, fine_gate=True)
    out_f = jax.block_until_ready(gated_residual(x, residual, params_f))
    ref_f = _reference(x, residual, params_f)
    assert jnp.allclose(out_f, ref_f, atol=1e-5, rtol=1e-5), "fine-gate mismatch"

    print("KERNEL_OK")
</pallas_src>

<mosaic_0001>
module attributes {stable_mosaic.version = 11 : i64} {
  func.func @_coarse_gate_kernel(%arg0: i32, %arg1: memref<16x32xf32, #tpu.memory_space<vmem>>, %arg2: memref<16x32xf32, #tpu.memory_space<vmem>>, %arg3: memref<1x32xf32, #tpu.memory_space<vmem>>, %arg4: memref<1x32xf32, #tpu.memory_space<vmem>>, %arg5: memref<1x1xf32, #tpu.memory_space<vmem>>, %arg6: memref<16x32xf32, #tpu.memory_space<vmem>>) attributes {dimension_semantics = [#tpu.dimension_semantics<parallel>], iteration_bounds = array<i64: 1>, scalar_prefetch = 0 : i64, scratch_operands = 0 : i64, tpu.core_type = #tpu.core_type<tc>, window_params = [{transform_indices = @transform_0, window_bounds = array<i64: 16, 32>}, {transform_indices = @transform_1, window_bounds = array<i64: 16, 32>}, {pipeline_mode = #tpu.pipeline_mode<synchronous>, transform_indices = @transform_2, window_bounds = array<i64: 1, 32>}, {pipeline_mode = #tpu.pipeline_mode<synchronous>, transform_indices = @transform_3, window_bounds = array<i64: 1, 32>}, {pipeline_mode = #tpu.pipeline_mode<synchronous>, transform_indices = @transform_4, window_bounds = array<i64: 1, 1>}, {transform_indices = @transform_5, window_bounds = array<i64: 16, 32>}]} {
    %c0 = arith.constant 0 : index
    %c0_0 = arith.constant 0 : index
    %0 = vector.load %arg1[%c0, %c0_0] : memref<16x32xf32, #tpu.memory_space<vmem>>, vector<16x32xf32>
    %c0_1 = arith.constant 0 : index
    %c0_2 = arith.constant 0 : index
    %1 = vector.load %arg2[%c0_1, %c0_2] : memref<16x32xf32, #tpu.memory_space<vmem>>, vector<16x32xf32>
    %c0_3 = arith.constant 0 : index
    %c0_4 = arith.constant 0 : index
    %2 = vector.load %arg3[%c0_3, %c0_4] : memref<1x32xf32, #tpu.memory_space<vmem>>, vector<1x32xf32>
    %c0_5 = arith.constant 0 : index
    %c0_6 = arith.constant 0 : index
    %3 = vector.load %arg4[%c0_5, %c0_6] : memref<1x32xf32, #tpu.memory_space<vmem>>, vector<1x32xf32>
    %4 = vector.broadcast %2 : vector<1x32xf32> to vector<16x32xf32>
    %5 = arith.mulf %0, %4 : vector<16x32xf32>
    %6 = vector.broadcast %3 : vector<1x32xf32> to vector<16x32xf32>
    %7 = arith.mulf %1, %6 : vector<16x32xf32>
    %8 = arith.addf %5, %7 : vector<16x32xf32>
    %cst = arith.constant dense<0.000000e+00> : vector<16xf32>
    %9 = vector.multi_reduction <add>, %8, %cst [1] : vector<16x32xf32> to vector<16xf32>
    %10 = vector.shape_cast %9 : vector<16xf32> to vector<16x1xf32>
    %c0_7 = arith.constant 0 : index
    %c0_8 = arith.constant 0 : index
    %11 = vector.load %arg5[%c0_7, %c0_8] : memref<1x1xf32, #tpu.memory_space<vmem>>, vector<1x1xf32>
    %12 = vector.broadcast %11 : vector<1x1xf32> to vector<16x1xf32>
    %13 = arith.addf %10, %12 : vector<16x1xf32>
    %14 = arith.negf %13 : vector<16x1xf32>
    %15 = math.exp %14 : vector<16x1xf32>
    %cst_9 = arith.constant 1.000000e+00 : f32
    %16 = vector.broadcast %cst_9 : f32 to vector<16x1xf32>
    %17 = arith.addf %16, %15 : vector<16x1xf32>
    %18 = arith.divf %16, %17 : vector<16x1xf32>
    %19 = arith.subf %1, %0 : vector<16x32xf32>
    %20 = vector.broadcast %18 : vector<16x1xf32> to vector<16x32xf32>
    %21 = arith.mulf %20, %19 : vector<16x32xf32>
    %22 = arith.addf %0, %21 : vector<16x32xf32>
    %c0_10 = arith.constant 0 : index
    %c0_11 = arith.constant 0 : index
    %23 = vector.load %arg6[%c0_10, %c0_11] : memref<16x32xf32, #tpu.memory_space<vmem>>, vector<16x32xf32>
    tpu.vector_store %arg6[%c0_10, %c0_11], %22 {strides = array<i32>} : memref<16x32xf32, #tpu.memory_space<vmem>>, vector<16x32xf32>,
    return
  }
  func.func @transform_0(%arg0: i32) -> (i32, i32) {
    %c0_i32 = arith.constant 0 : i32
    %c0_i32_0 = arith.constant 0 : i32
    return %arg0, %c0_i32 : i32, i32
  }
  func.func @transform_1(%arg0: i32) -> (i32, i32) {
    %c0_i32 = arith.constant 0 : i32
    %c0_i32_0 = arith.constant 0 : i32
    return %arg0, %c0_i32 : i32, i32
  }
  func.func @transform_2(%arg0: i32) -> (i32, i32) {
    %c0_i32 = arith.constant 0 : i32
    %c0_i32_0 = arith.constant 0 : i32
    %c0_i32_1 = arith.constant 0 : i32
    return %c0_i32, %c0_i32_0 : i32, i32
  }
  func.func @transform_3(%arg0: i32) -> (i32, i32) {
    %c0_i32 = arith.constant 0 : i32
    %c0_i32_0 = arith.constant 0 : i32
    %c0_i32_1 = arith.constant 0 : i32
    return %c0_i32, %c0_i32_0 : i32, i32
  }
  func.func @transform_4(%arg0: i32) -> (i32, i32) {
    %c0_i32 = arith.constant 0 : i32
    %c0_i32_0 = arith.constant 0 : i32
    %c0_i32_1 = arith.constant 0 : i32
    return %c0_i32, %c0_i32_0 : i32, i32
  }
  func.func @transform_5(%arg0: i32) -> (i32, i32) {
    %c0_i32 = arith.constant 0 : i32
    %c0_i32_0 = arith.constant 0 : i32
    return %arg0, %c0_i32 : i32, i32
  }
}

</mosaic_0001>

<bundles_post_ra>
// kernel: tpu_custom_call.1
= control target key start
LH: loop header
LB: loop body
LE: loop exit
PB: predicated region body
PF: predicated region fallthrough
CT: control target
= control target key end

     0   :  { %s326_s0 = inlined_call_operand.hbm [shape: f32[16,32], index: 0, kind: input, shape index: {}]   ;;  %s327_s1 = inlined_call_operand.hbm [shape: f32[16,32], index: 1, kind: input, shape index: {}]   ;;  %s328_s2 = inlined_call_operand.vmem [shape: f32[1,32], index: 2, kind: input, shape index: {}]   ;;  %s329_s3 = inlined_call_operand.vmem [shape: f32[1,32], index: 3, kind: input, shape index: {}]   ;;  %s330_s4 = inlined_call_operand.<no memory space> [shape: f32[1,1], index: 4, kind: input, shape index: {}]   ;;  %s331_s5 = inlined_call_operand.hbm [shape: f32[16,32], index: 5, kind: output, shape index: {}]  }
   0x1   :  { %v10_v0 = vstv %s330_s4 }
   0x2   :  { %11 = vst [vmem:[#allocation2] sm:$0x1] %v10_v0 }
   0x3   :  { %12 = vsyncpa [#allocation4], 0 }
   0x4   :  { %13 = vsyncpa [#allocation7], 0 }
   0x5   :  { %14 = vsyncpa [#allocation5], 0  ;;  %s232_s20 = smov [#allocation3]   ;;  %s160_s24 = scalar_lea.hbm %s326_s0, 256 }
   0x6   :  { %s20_s21 = sshll.u32 %s232_s20, 4  ;;  %p161_p0 = scmp.ne.s32.totalorder %s326_s0, %s160_s24  ;;  %s21_s21 = int_to_ptr.vmem [resolvable:$true] %s20_s21 }
   0x7   :  { %p164_p1 = scmp.lt.u32.totalorder %s160_s24, %s326_s0 }
   0x9   :  { %p166_p2 = pnand %p164_p1, %p161_p0 }
   0xb   :  { %169 = shalt.err (!%p166_p2)
}
   0xc   :  { %s170_s4 = scalar_lea.vmem %s21_s21, 256  ;;  %p175_p4 = scmp.lt.s32.totalorder %s21_s21, %s21_s21 }
   0xd   :  { %p171_p3 = scmp.ne.s32.totalorder %s21_s21, %s170_s4  ;;  %p176_p5 = scmp.lt.s32.totalorder %s170_s4, %s170_s4 }
   0xf   :  { %p177_p6 = por %p176_p5, %p175_p4 }
  0x11   :  { %p178_p7 = pnand %p177_p6, %p171_p3 }
  0x13   :  { %181 = shalt.err (!%p178_p7)
}
  0x14   :  { %s233_s29 = smov 128   ;;  %s234_s30 = smov 8  }
  0x15   :  { %26 = dma.hbm_to_vmem [thread:$0]  %s326_s0, 256, %s21_s21, [#allocation4], %s233_s29, %s233_s29, %s234_s30  }
  0x16   :  { %s235_s8 = smov [#allocation6]   ;;  %s182_s12 = scalar_lea.hbm %s327_s1, 256 }
  0x17   :  { %s32_s9 = sshll.u32 %s235_s8, 4  ;;  %p183_p8 = scmp.ne.s32.totalorder %s327_s1, %s182_s12  ;;  %s33_s9 = int_to_ptr.vmem [resolvable:$true] %s32_s9 }
  0x18   :  { %p186_p9 = scmp.lt.u32.totalorder %s182_s12, %s327_s1 }
  0x1a   :  { %p188_p10 = pnand %p186_p9, %p183_p8 }
  0x1c   :  { %191 = shalt.err (!%p188_p10)
}
  0x1d   :  { %s192_s17 = scalar_lea.vmem %s33_s9, 256  ;;  %p197_p12 = scmp.lt.s32.totalorder %s33_s9, %s33_s9 }
  0x1e   :  { %p193_p11 = scmp.ne.s32.totalorder %s33_s9, %s192_s17  ;;  %p198_p13 = scmp.lt.s32.totalorder %s192_s17, %s192_s17 }
  0x20   :  { %p199_p0 = por %p198_p13, %p197_p12 }
  0x22   :  { %p200_p1 = pnand %p199_p0, %p193_p11 }
  0x24   :  { %203 = shalt.err (!%p200_p1)
}
  0x25   :  { %38 = dma.hbm_to_vmem [thread:$0]  %s327_s1, 256, %s33_s9, [#allocation7], %s233_s29, %s233_s29, %s234_s30  }
  0x26   :  { %226 = dma.done.wait [#allocation4], 256  }
  0x27   :  { %227 = vsyncadd [#allocation4], 4294967040 }
  0x28   :  { %228 = dma.done.wait [#allocation7], 256  }
  0x29   :  { %229 = vsyncadd [#allocation7], 4294967040  ;;  %v51_v1 = vld [vmem:[#allocation3] sm:$0xff]  ;;  %v53_v2 = vld [vmem:[#allocation6] sm:$0xff]  ;;  %vm75_vm0 = vcmask 261120   ;;  %v236_v15 = vmov 0  }
  0x2a   :  { %v139_v3 = vld [vmem:[%s328_s2] ss:$0 sm:$0xff]  ;;  %v52_v6 = vld [vmem:[#allocation3 + $0x8] sm:$0xff]  ;;  %150 = vset.pattern.permute.xlu1 %v236_v15  ;;  %151 = vset.pattern.permute.xlu0 %v236_v15  ;;  %v103_v29 = vsub.f32 %v53_v2, %v51_v1  ;;  %s237_s1 = smov [#allocation8]  }
  0x2b   :  { %v140_v4 = vld [vmem:[%s329_s3] ss:$0 sm:$0xff]  ;;  %v63_v5 = vmul.f32 %v139_v3, %v51_v1  ;;  %v64_v9 = vmul.f32 %v139_v3, %v52_v6  ;;  %s126_s2 = sshll.u32 %s237_s1, 4  ;;  %s127_s2 = int_to_ptr.vmem [resolvable:$true] %s126_s2 }
  0x2c   :  { %v54_v7 = vld [vmem:[#allocation6 + $0x8] sm:$0xff]  ;;  %v71_v8 = vmul.f32 %v140_v4, %v53_v2  ;;  %s204_s3 = scalar_lea.vmem %s127_s2, 256  ;;  %p209_p3 = scmp.lt.s32.totalorder %s127_s2, %s127_s2 }
  0x2d   :  { %v72_v10 = vmul.f32 %v140_v4, %v54_v7  ;;  %v141_v16 = vld [vmem:[#allocation2] ss:$0 sm:$0xff]  ;;  %v104_v32 = vsub.f32 %v54_v7, %v52_v6  ;;  %p205_p2 = scmp.ne.s32.totalorder %s127_s2, %s204_s3  ;;  %p210_p4 = scmp.lt.s32.totalorder %s204_s3, %s204_s3 }
  0x2e   :  { %v73_v11 = vadd.f32 %v71_v8, %v63_v5 }
  0x2f   :  { %v74_v12 = vadd.f32 %v72_v10, %v64_v9  ;;  %p211_p5 = por %p210_p4, %p209_p3 }
  0x30   :  { %v76_v13 = vsel %vm75_vm0, %v73_v11, 0.0 }
  0x31   :  { %77 = vadd.xlane.f32.xlu0 %v76_v13  ;;  %v79_v14 = vsel %vm75_vm0, %v74_v12, 0.0  ;;  %p212_p6 = pnand %p211_p5, %p205_p2 }
  0x35   :  { %80 = vadd.xlane.f32.xlu0 %v79_v14 }
  0xbe   :  { %v78_v17 = vpop.xlane.xlu0 %77 }
  0xbf   :  { %v89_v18 = vadd.f32 %v141_v16, %v78_v17 }
  0xc1   :  { %v142_v19 = vmul.f32 -1.442695, %v89_v18 }
  0xc2   :  { %v81_v20 = vpop.xlane.xlu0 %80 }
  0xc3   :  { %152 = vpow2.f32 %v142_v19  ;;  %v90_v21 = vadd.f32 %v141_v16, %v81_v20 }
  0xc5   :  { %v143_v22 = vmul.f32 -1.442695, %v90_v21 }
  0xc7   :  { %154 = vpow2.f32 %v143_v22 }
  0xcd   :  { %v153_v23 = vpop.eup %152 }
  0xce   :  { %v97_v24 = vadd.f32 1.0, %v153_v23 }
  0xd0   :  { %156 = vrcp.f32 %v97_v24 }
  0xd1   :  { %v155_v25 = vpop.eup %154 }
  0xd2   :  { %v98_v26 = vadd.f32 1.0, %v155_v25 }
  0xd4   :  { %158 = vrcp.f32 %v98_v26 }
  0xda   :  { %v157_v27 = vpop.eup %156 }
  0xdb   :  { %107 = vperm.xlu1 %150, %v157_v27  }
  0xde   :  { %v159_v28 = vpop.eup %158 }
  0xdf   :  { %112 = vperm.xlu1 %150, %v159_v28  }
 0x15a   :  { %v108_v30 = vpop.permute.xlu1 %107 }
 0x15b   :  { %v115_v31 = vmul.f32 %v108_v30, %v103_v29 }
 0x15d   :  { %v117_v33 = vadd.f32 %v115_v31, %v51_v1 }
 0x15e   :  { %v113_v34 = vpop.permute.xlu1 %112 }
 0x15f   :  { %119 = vst.msk [vmem:[#allocation8] sm:$0xff] %vm75_vm0, %v117_v33  ;;  %v116_v35 = vmul.f32 %v113_v34, %v104_v32 }
 0x161   :  { %v118_v36 = vadd.f32 %v116_v35, %v52_v6 }
 0x163   :  { %120 = vst.msk [vmem:[#allocation8 + $0x8] sm:$0xff] %vm75_vm0, %v118_v36 }
 0x164   :  { %215 = shalt.err (!%p212_p6)
}
 0x165   :  { %s216_s25 = scalar_lea.hbm %s331_s5, 256 }
 0x166   :  { %p217_p7 = scmp.ne.s32.totalorder %s331_s5, %s216_s25  ;;  %p220_p8 = scmp.lt.u32.totalorder %s216_s25, %s331_s5 }
 0x168   :  { %p222_p9 = pnand %p220_p8, %p217_p7 }
 0x16a   :  { %225 = shalt.err (!%p222_p9)
}
 0x16b   :  { %132 = dma.vmem_to_hbm [thread:$0]  %s127_s2, 256, %s331_s5, [#allocation5], %s233_s29, %s233_s29, %s234_s30  }
 0x16c   :  { %230 = dma.done.wait [#allocation5], 256  }
 0x16d   :  { %231 = vsyncadd [#allocation5], 4294967040 }
 0x16e   :  { %136 = vsyncpa [#allocation4], 1 }
 0x16f   :  { %137 = vsyncpa [#allocation7], 1 }
 0x170   :  { %138 = vsyncpa [#allocation5], 1 }

</bundles_post_ra>
